<compile_context>
chip_gen: v6e
topology: v6e:2x2x1
jax: 0.10.0
libtpu: 0.0.40
codegen_flags: <defaults>
</compile_context>

<pallas_src>
import functools

import jax
import jax.numpy as jnp
from jax.experimental import pallas as pl
from jax.experimental.pallas import tpu as pltpu

DROPOUT_P = 0.5


def _mc_mlp_kernel(x_ref, w1_ref, b1_ref, w2_ref, b2_ref, bits_ref, o_ref,
                   *, keep_prob):
    """All Monte-Carlo samples in one invocation (single grid step)."""
    S, B, H = bits_ref.shape

    # Sample-invariant hidden layer, computed once (hoisted out of the
    # per-sample work).  Inverted-dropout scale is also hoisted.
    h = jnp.dot(x_ref[...], w1_ref[...], preferred_element_type=jnp.float32)
    h = jnp.maximum(h + b1_ref[...], 0.0)                     # (B, H)
    h = h * jnp.float32(1.0 / keep_prob)

    # Bernoulli(keep_prob) via integer threshold: keep iff bits < p*2^32.
    thr = jnp.uint32(min(int(round(keep_prob * 2.0 ** 32)), 2 ** 32 - 1))
    keep = bits_ref[...] < thr                                # (S, B, H)
    hid = jnp.where(keep, h[None, :, :], jnp.float32(0.0))    # (S, B, H)
    hid = hid.reshape(S * B, H)                               # tile-aligned merge

    # One batched second-layer matmul for all samples: [S*B, H] @ [H, C].
    out = jnp.dot(hid, w2_ref[...], preferred_element_type=jnp.float32)
    o_ref[...] = (out + b2_ref[...]).astype(o_ref.dtype)      # (S*B, C)


def _det_mlp_kernel(x_ref, w1_ref, b1_ref, w2_ref, b2_ref, o_ref):
    """deterministic=True path: single pass, dropout disabled, no PRNG work."""
    h = jnp.dot(x_ref[...], w1_ref[...], preferred_element_type=jnp.float32)
    h = jnp.maximum(h + b1_ref[...], 0.0)
    out = jnp.dot(h, w2_ref[...], preferred_element_type=jnp.float32)
    o_ref[...] = (out + b2_ref[...]).astype(o_ref.dtype)      # (B, C)


def _vmem_spec():
    return pl.BlockSpec(memory_space=pltpu.MemorySpace.VMEM)


def monte_carlo_forward(params, x, *, sample_size, seed=0, deterministic=False):
    """Pallas equivalent of MonteCarloWrapper.forward."""
    w1, b1, w2, b2 = params
    B = x.shape[0]
    H = w1.shape[1]
    C = w2.shape[1]

    if deterministic:
        # Compile-time branch: no dropout bits, no mask math traced.
        return pl.pallas_call(
            _det_mlp_kernel,
            out_shape=jax.ShapeDtypeStruct((B, C), jnp.float32),
            in_specs=[_vmem_spec() for _ in range(5)],
            out_specs=_vmem_spec(),
        )(x, w1, b1, w2, b2)

    keep_prob = 1.0 - DROPOUT_P
    # Independent dropout bits per (sample, batch row, hidden unit); one key
    # per call, so no cross-call seed collisions (no `seed + s` arithmetic).
    bits = jax.random.bits(jax.random.PRNGKey(seed), (sample_size, B, H),
                           dtype=jnp.uint32)

    kernel = functools.partial(_mc_mlp_kernel, keep_prob=keep_prob)
    out_flat = pl.pallas_call(
        kernel,
        out_shape=jax.ShapeDtypeStruct((sample_size * B, C), jnp.float32),
        in_specs=[_vmem_spec() for _ in range(6)],
        out_specs=_vmem_spec(),
    )(x, w1, b1, w2, b2, bits)

    # torch.stack(samples, dim=BAYESIAN_SAMPLE_DIM=1): (S*B, C) -> (B, S, C).
    return jnp.transpose(out_flat.reshape(sample_size, B, C), (1, 0, 2))


if __name__ == "__main__":
    key = jax.random.PRNGKey(0)
    kx, k1, k2, k3, k4 = jax.random.split(key, 5)

    B, D_in, H, C = 8, 32, 128, 16
    sample_size = 4

    # Deterministic synthetic parameters (no checkpoint load).
    x = jax.random.normal(kx, (B, D_in), dtype=jnp.float32)
    w1 = jax.random.normal(k1, (D_in, H), dtype=jnp.float32) * 0.1
    b1 = jax.random.normal(k2, (1, H), dtype=jnp.float32) * 0.01
    w2 = jax.random.normal(k3, (H, C), dtype=jnp.float32) * 0.1
    b2 = jax.random.normal(k4, (1, C), dtype=jnp.float32) * 0.01
    params = (w1, b1, w2, b2)

    # Monte-Carlo (stochastic) path: [B, sample_size, C]
    mc_out = jax.block_until_ready(
        monte_carlo_forward(params, x, sample_size=sample_size, seed=1234))
    assert mc_out.shape == (B, sample_size, C), mc_out.shape
    # Different samples must use different dropout masks.
    assert not bool(jnp.allclose(mc_out[:, 0], mc_out[:, 1]))

    # deterministic=True path: single pass, dropout disabled -> [B, C]
    det_out = jax.block_until_ready(
        monte_carlo_forward(params, x, sample_size=sample_size,
                            deterministic=True))
    assert det_out.shape == (B, C), det_out.shape

    # Reference check for the deterministic path (plain wrapped-model output).
    ref_det = jnp.maximum(x @ w1 + b1, 0.0) @ w2 + b2
    assert jnp.allclose(det_out, ref_det, atol=1e-5, rtol=1e-5)

    print("KERNEL_OK")
</pallas_src>

<mosaic_0001>
module attributes {stable_mosaic.version = 11 : i64} {
  func.func @_mc_mlp_kernel(%arg0: memref<8x32xf32, #tpu.memory_space<vmem>>, %arg1: memref<32x128xf32, #tpu.memory_space<vmem>>, %arg2: memref<1x128xf32, #tpu.memory_space<vmem>>, %arg3: memref<128x16xf32, #tpu.memory_space<vmem>>, %arg4: memref<1x16xf32, #tpu.memory_space<vmem>>, %arg5: memref<4x8x128xi32, #tpu.memory_space<vmem>>, %arg6: memref<32x16xf32, #tpu.memory_space<vmem>>) attributes {dimension_semantics = [], scalar_prefetch = 0 : i64, scratch_operands = 0 : i64, tpu.core_type = #tpu.core_type<tc>} {
    %c0 = arith.constant 0 : index
    %c0_0 = arith.constant 0 : index
    %0 = vector.load %arg0[%c0, %c0_0] : memref<8x32xf32, #tpu.memory_space<vmem>>, vector<8x32xf32>
    %c0_1 = arith.constant 0 : index
    %c0_2 = arith.constant 0 : index
    %1 = vector.load %arg1[%c0_1, %c0_2] : memref<32x128xf32, #tpu.memory_space<vmem>>, vector<32x128xf32>
    %cst = arith.constant dense<0.000000e+00> : vector<8x128xf32>
    %2 = tpu.matmul %0, %1, %cst {dimension_numbers = #tpu.dot_dimension_numbers<[1], [0], [0], [1], [0, 0, 1, 1], [], []>} : vector<8x32xf32>, vector<32x128xf32>, vector<8x128xf32> -> vector<8x128xf32>
    %c0_3 = arith.constant 0 : index
    %c0_4 = arith.constant 0 : index
    %3 = vector.load %arg2[%c0_3, %c0_4] : memref<1x128xf32, #tpu.memory_space<vmem>>, vector<1x128xf32>
    %4 = vector.broadcast %3 : vector<1x128xf32> to vector<8x128xf32>
    %5 = arith.addf %2, %4 : vector<8x128xf32>
    %cst_5 = arith.constant 0.000000e+00 : f32
    %6 = vector.broadcast %cst_5 : f32 to vector<8x128xf32>
    %7 = arith.maximumf %5, %6 : vector<8x128xf32>
    %cst_6 = arith.constant 2.000000e+00 : f32
    %8 = vector.broadcast %cst_6 : f32 to vector<8x128xf32>
    %9 = arith.mulf %7, %8 : vector<8x128xf32>
    %c0_7 = arith.constant 0 : index
    %c0_8 = arith.constant 0 : index
    %c0_9 = arith.constant 0 : index
    %10 = vector.load %arg5[%c0_7, %c0_8, %c0_9] : memref<4x8x128xi32, #tpu.memory_space<vmem>>, vector<4x8x128xi32>
    %c-2147483648_i32 = arith.constant -2147483648 : i32
    %11 = vector.broadcast %c-2147483648_i32 : i32 to vector<4x8x128xi32>
    %12 = arith.cmpi ult, %10, %11 : vector<4x8x128xi32>
    %13 = vector.shape_cast %9 : vector<8x128xf32> to vector<1x8x128xf32>
    %cst_10 = arith.constant 0.000000e+00 : f32
    %14 = vector.shape_cast %13 : vector<1x8x128xf32> to vector<1x8x128xf32>
    %15 = vector.broadcast %14 : vector<1x8x128xf32> to vector<4x8x128xf32>
    %16 = vector.broadcast %cst_10 : f32 to vector<4x8x128xf32>
    %17 = arith.select %12, %15, %16 : vector<4x8x128xi1>, vector<4x8x128xf32>
    %18 = vector.shape_cast %17 : vector<4x8x128xf32> to vector<32x128xf32>
    %c0_11 = arith.constant 0 : index
    %c0_12 = arith.constant 0 : index
    %19 = vector.load %arg3[%c0_11, %c0_12] : memref<128x16xf32, #tpu.memory_space<vmem>>, vector<128x16xf32>
    %cst_13 = arith.constant dense<0.000000e+00> : vector<32x16xf32>
    %20 = tpu.matmul %18, %19, %cst_13 {dimension_numbers = #tpu.dot_dimension_numbers<[1], [0], [0], [1], [0, 0, 1, 1], [], []>} : vector<32x128xf32>, vector<128x16xf32>, vector<32x16xf32> -> vector<32x16xf32>
    %c0_14 = arith.constant 0 : index
    %c0_15 = arith.constant 0 : index
    %21 = vector.load %arg4[%c0_14, %c0_15] : memref<1x16xf32, #tpu.memory_space<vmem>>, vector<1x16xf32>
    %22 = vector.broadcast %21 : vector<1x16xf32> to vector<32x16xf32>
    %23 = arith.addf %20, %22 : vector<32x16xf32>
    %c0_16 = arith.constant 0 : index
    %c0_17 = arith.constant 0 : index
    %24 = vector.load %arg6[%c0_16, %c0_17] : memref<32x16xf32, #tpu.memory_space<vmem>>, vector<32x16xf32>
    tpu.vector_store %arg6[%c0_16, %c0_17], %23 {strides = array<i32>} : memref<32x16xf32, #tpu.memory_space<vmem>>, vector<32x16xf32>,
    return
  }
}

</mosaic_0001>

<bundles_post_ra>
// kernel: tpu_custom_call.1
= control target key start
LH: loop header
LB: loop body
LE: loop exit
PB: predicated region body
PF: predicated region fallthrough
CT: control target
= control target key end

     0   :  { %v323_v0 = vmov 0.0   ;;  %vm324_vm0 = vmmov 0   ;;  %vm35_vm1 = vcmask 261120   ;;  %vm231_vm6 = vcmask 130048   ;;  %s453_s1 = inlined_call_operand.vmem [shape: f32[32,128], index: 1, kind: input, shape index: {}]   ;;  %s454_s3 = inlined_call_operand.vmem [shape: f32[128,16], index: 3, kind: input, shape index: {}]   ;;  %s455_s0 = inlined_call_operand.vmem [shape: f32[8,32], index: 0, kind: input, shape index: {}]   ;;  %s456_s2 = inlined_call_operand.vmem [shape: f32[1,128], index: 2, kind: input, shape index: {}]   ;;  %s457_s5 = inlined_call_operand.vmem [shape: u32[4,8,128], index: 5, kind: input, shape index: {}]   ;;  %s458_s4 = inlined_call_operand.vmem [shape: f32[1,16], index: 4, kind: input, shape index: {}]   ;;  %s459_s6 = inlined_call_operand.vmem [shape: f32[32,16], index: 6, kind: output, shape index: {}]  }
   0x1   :  { %272 = vmatprep.subr.mxu0 %v323_v0  ;;  %v27_v1 = vld [vmem:[%s453_s1 + $0x18] sm:$0xff]  ;;  %v26_v2 = vld [vmem:[%s453_s1 + $0x10] sm:$0xff]  ;;  %280 = vmatprep.mubr.msk.f32.mxu0 %vm324_vm0, %v323_v0  ;;  %v25_v4 = vld [vmem:[%s453_s1 + $0x8] sm:$0xff] }
   0x2   :  { %273 = vmatpush3.msra.mxu0 %v27_v1  ;;  %v138_v3 = vld [vmem:[%s454_s3 + $0x78] sm:$0xff]  ;;  %v137_v5 = vld [vmem:[%s454_s3 + $0x70] sm:$0xff]  ;;  %v136_v6 = vld [vmem:[%s454_s3 + $0x68] sm:$0xff] }
   0x3   :  { %274 = vmatprep.subr.mxu0 %v323_v0  ;;  %283 = vmatprep.subr.mxu1 %v138_v3  ;;  %v24_v7 = vld [vmem:[%s453_s1] sm:$0xff]  ;;  %v134_v10 = vld [vmem:[%s454_s3 + $0x58] sm:$0xff]  ;;  %v133_v11 = vld [vmem:[%s454_s3 + $0x50] sm:$0xff] }
   0x4   :  { %275 = vmatpush3.msra.mxu0 %v26_v2  ;;  %284 = vmatpush3.msra.mxu1 %v138_v3  ;;  %v23_v8 = vld [vmem:[%s455_s0] sm:$0xff]  ;;  %v132_v12 = vld [vmem:[%s454_s3 + $0x48] sm:$0xff]  ;;  %v130_v14 = vld [vmem:[%s454_s3 + $0x38] sm:$0xff] }
   0x5   :  { %276 = vmatprep.subr.mxu0 %v323_v0  ;;  %285 = vmatprep.subr.mxu1 %v137_v5  ;;  %v135_v9 = vld [vmem:[%s454_s3 + $0x60] sm:$0xff]  ;;  %v129_v15 = vld [vmem:[%s454_s3 + $0x30] sm:$0xff]  ;;  %v128_v16 = vld [vmem:[%s454_s3 + $0x28] sm:$0xff] }
   0x6   :  { %277 = vmatpush3.msra.mxu0 %v25_v4  ;;  %286 = vmatpush3.msra.mxu1 %v137_v5  ;;  %v131_v13 = vld [vmem:[%s454_s3 + $0x40] sm:$0xff]  ;;  %v126_v18 = vld [vmem:[%s454_s3 + $0x18] sm:$0xff]  ;;  %v125_v19 = vld [vmem:[%s454_s3 + $0x10] sm:$0xff] }
   0x7   :  { %278 = vmatprep.subr.mxu0 %v323_v0  ;;  %287 = vmatprep.subr.mxu1 %v136_v6  ;;  %v127_v17 = vld [vmem:[%s454_s3 + $0x20] sm:$0xff]  ;;  %v124_v20 = vld [vmem:[%s454_s3 + $0x8] sm:$0xff]  ;;  %v113_v29 = vld [vmem:[%s457_s5 + $0x10] sm:$0xff] }
   0x8   :  { %279 = vmatpush3.msra.mxu0 %v24_v7  ;;  %288 = vmatpush3.msra.mxu1 %v136_v6  ;;  %v123_v21 = vld [vmem:[%s454_s3] sm:$0xff]  ;;  %v112_v27 = vld [vmem:[%s457_s5 + $0x8] sm:$0xff]  ;;  %vm117_vm4 = vcmp.lt.u32.totalorder %v113_v29, 2147483648  ;;  %v114_v31 = vld [vmem:[%s457_s5 + $0x18] sm:$0xff] }
   0x9   :  { %281 = vmatmul.mubr.msk.f32.vlgmr.msra.gmra.mxu0 %vm35_vm1, %v23_v8  ;;  %289 = vmatprep.subr.mxu1 %v135_v9  ;;  %v240_v22 = vld [vmem:[%s456_s2] ss:$0 sm:$0xff]  ;;  %vm116_vm3 = vcmp.lt.u32.totalorder %v112_v27, 2147483648  ;;  %vm118_vm5 = vcmp.lt.u32.totalorder %v114_v31, 2147483648 }
   0xa   :  { %290 = vmatpush3.msra.mxu1 %v135_v9  ;;  %v111_v25 = vld [vmem:[%s457_s5] sm:$0xff] }
   0xb   :  { %291 = vmatprep.subr.mxu1 %v134_v10  ;;  %vm115_vm2 = vcmp.lt.u32.totalorder %v111_v25, 2147483648  ;;  %v242_v32 = vld [vmem:[%s458_s4] ss:$0 sm:$0xff] }
   0xc   :  { %292 = vmatpush3.msra.mxu1 %v134_v10 }
   0xd   :  { %293 = vmatprep.subr.mxu1 %v133_v11 }
   0xe   :  { %294 = vmatpush3.msra.mxu1 %v133_v11 }
   0xf   :  { %295 = vmatprep.subr.mxu1 %v132_v12 }
  0x10   :  { %296 = vmatpush3.msra.mxu1 %v132_v12 }
  0x11   :  { %297 = vmatprep.subr.mxu1 %v131_v13 }
  0x12   :  { %298 = vmatpush3.msra.mxu1 %v131_v13 }
  0x13   :  { %299 = vmatprep.subr.mxu1 %v130_v14 }
  0x14   :  { %300 = vmatpush3.msra.mxu1 %v130_v14 }
  0x15   :  { %301 = vmatprep.subr.mxu1 %v129_v15 }
  0x16   :  { %302 = vmatpush3.msra.mxu1 %v129_v15 }
  0x17   :  { %303 = vmatprep.subr.mxu1 %v128_v16 }
  0x18   :  { %304 = vmatpush3.msra.mxu1 %v128_v16 }
  0x19   :  { %305 = vmatprep.subr.mxu1 %v127_v17 }
  0x1a   :  { %306 = vmatpush3.msra.mxu1 %v127_v17 }
  0x1b   :  { %307 = vmatprep.subr.mxu1 %v126_v18 }
  0x1c   :  { %308 = vmatpush3.msra.mxu1 %v126_v18 }
  0x1d   :  { %309 = vmatprep.subr.mxu1 %v125_v19 }
  0x1e   :  { %310 = vmatpush3.msra.mxu1 %v125_v19 }
  0x1f   :  { %311 = vmatprep.subr.mxu1 %v124_v20 }
  0x20   :  { %312 = vmatpush3.msra.mxu1 %v124_v20 }
  0x21   :  { %313 = vmatprep.subr.mxu1 %v123_v21 }
  0x22   :  { %314 = vmatpush3.msra.mxu1 %v123_v21 }
  0xc9   :  { %v105_v23 = vpop.f32.mrf.mxu0 }
  0xca   :  { %v106_v24 = vadd.f32 %v240_v22, %v105_v23 }
  0xcb   :  { %v282_v26 = vpop.f32.mrf.mxu0 }
  0xcc   :  { %v109_v28 = vmax.f32 %v106_v24, 0.0 }
  0xce   :  { %v110_v30 = vmul.f32 2.0, %v109_v28 }
  0xd0   :  { %315 = vmatprep.mubr.msk.f32.mxu1 %vm115_vm2, %v110_v30 }
  0xd1   :  { %316 = vmatmul.mubr.msk.f32.vlgmr.msra.gmra.mxu1 %vm116_vm3, %v110_v30 }
  0xd2   :  { %318 = vmatprep.mubr.msk.f32.mxu1 %vm117_vm4, %v110_v30 }
  0xd5   :  { %319 = vmatmul.mubr.msk.f32.gmra.mxu1 %vm118_vm5, %v110_v30 }
 0x191   :  { %v317_v33 = vpop.f32.mrf.mxu1 }
 0x192   :  { %v218_v34 = vadd.f32 %v317_v33, %v242_v32 }
 0x193   :  { %v212_v35 = vpop.f32.mrf.mxu1 }
 0x194   :  { %233 = vst.msk [vmem:[%s459_s6 + $0x8] sm:$0xff] %vm231_vm6, %v218_v34  ;;  %v213_v36 = vadd.f32 %v242_v32, %v212_v35 }
 0x195   :  { %v320_v37 = vpop.f32.mrf.mxu1 }
 0x196   :  { %232 = vst.msk [vmem:[%s459_s6] sm:$0xff] %vm231_vm6, %v213_v36  ;;  %v228_v38 = vadd.f32 %v320_v37, %v242_v32 }
 0x197   :  { %v222_v39 = vpop.f32.mrf.mxu1 }
 0x198   :  { %235 = vst.msk [vmem:[%s459_s6 + $0x18] sm:$0xff] %vm231_vm6, %v228_v38  ;;  %v223_v40 = vadd.f32 %v242_v32, %v222_v39 }
 0x19a   :  { %234 = vst.msk [vmem:[%s459_s6 + $0x10] sm:$0xff] %vm231_vm6, %v223_v40 }

</bundles_post_ra>
